<compile_context>
chip_gen: v7x
topology: tpu7x:2x2x1
jax: 0.10.0
libtpu: 0.0.40
codegen_flags: <defaults>
</compile_context>

<pallas_src>
import jax
import jax.numpy as jnp
from jax.experimental import pallas as pl
from jax.experimental.pallas import tpu as pltpu


# ----------------------------------------------------------------------------
# Kernel
# ----------------------------------------------------------------------------
def _compl_mul_kernel(x_ref, w_ref, o_ref):
    """One tile of the complex contraction 'bim,iom->bom'.

    x_ref: (2, B_t, Cin_t, M_t)   f32, [real, imag] stacked on the leading axis
    w_ref: (2, Cin_t, Cout_t, M_t) f32
    o_ref: (2, B_t, Cout_t, M_t)  f32 (revisited only if Cin is tiled)
    """
    b_t = x_ref.shape[1]
    cin_t = x_ref.shape[2]
    cout_t = w_ref.shape[2]
    m_t = w_ref.shape[3]

    is_first = pl.program_id(3) == 0     # first (usually only) Cin step
    is_rest = pl.program_id(3) > 0

    for b in range(b_t):                 # small static loop over batch slots
        def cin_step(i, carry):
            acc_r, acc_i = carry
            # Direct ref reads: (1, M_t) x rows and (Cout_t, M_t) weight slabs.
            xr = x_ref[0, b, pl.ds(i, 1), :]
            xi = x_ref[1, b, pl.ds(i, 1), :]
            wr = w_ref[0, i]
            wi = w_ref[1, i]
            # Plain 4-multiply complex MAC (kernel is not VALU-bound; avoids
            # Karatsuba's extra VMEM temporaries).
            acc_r = acc_r + (xr * wr - xi * wi)
            acc_i = acc_i + (xr * wi + xi * wr)
            return acc_r, acc_i

        zeros = jnp.zeros((cout_t, m_t), jnp.float32)
        if cin_t <= 32:
            # Fully static unroll: acc stays in vregs, all slices static.
            acc_r, acc_i = zeros, zeros
            for i in range(cin_t):
                acc_r, acc_i = cin_step(i, (acc_r, acc_i))
        else:
            unroll = next(u for u in (8, 4, 2, 1) if cin_t % u == 0)
            acc_r, acc_i = jax.lax.fori_loop(
                0, cin_t, cin_step, (zeros, zeros), unroll=unroll)

        @pl.when(is_first)
        def _():
            o_ref[0, b] = acc_r
            o_ref[1, b] = acc_i

        @pl.when(is_rest)          # only taken when Cin spans multiple blocks
        def _():
            o_ref[0, b] = o_ref[0, b] + acc_r
            o_ref[1, b] = o_ref[1, b] + acc_i


# ----------------------------------------------------------------------------
# Tiling / wrapper
# ----------------------------------------------------------------------------
def _largest_divisor(total, candidates):
    """Largest candidate that divides `total`; falls back to `total`."""
    for c in candidates:
        if 0 < c <= total and total % c == 0:
            return c
    return total


def _select_tiles(B, Cin, Cout, Mp, vmem_cap):
    # Cin in one block for typical FNO channel counts -> no reduction revisits.
    if Cin <= 128 or Cin % 8 != 0:
        Cin_t = Cin
    else:
        Cin_t = _largest_divisor(Cin, (128, 64, 32, 16, 8))

    M_t = _largest_divisor(Mp, (512, 384, 256, 128))
    B_t = B
    if Cout % 8 == 0:
        # Cap Cout_t * M_t so each accumulator plane is <= 8 vregs.
        cands = tuple(c for c in (64, 32, 16, 8) if c * M_t <= 8192)
        Cout_t = _largest_divisor(Cout, cands if cands else (8,))
    else:
        Cout_t = Cout          # (8,128) rule: full dim is always legal

    def blocks_bytes(bt, ci, co, mt):
        x_b = 2 * bt * ci * mt * 4
        w_b = 2 * ci * co * mt * 4
        o_b = 2 * bt * co * mt * 4
        return 2 * (x_b + w_b + o_b)          # double-buffered in/out blocks

    budget = int(vmem_cap * 0.45)             # leave room for Mosaic scratch/temps

    # VMEM-fit guard: shrink tiles until double-buffered blocks fit the budget.
    while blocks_bytes(B_t, Cin_t, Cout_t, M_t) > budget:
        if B_t > 1:
            B_t = _largest_divisor(B, tuple(range(B_t // 2, 0, -1)))
        elif M_t > 128:
            M_t = _largest_divisor(Mp, tuple(m for m in (384, 256, 128) if m < M_t))
        elif Cout_t > 8 and Cout_t % 2 == 0 and (Cout_t // 2) % 8 == 0:
            Cout_t //= 2
        elif Cin_t > 8 and Cin_t % 2 == 0 and (Cin_t // 2) % 8 == 0:
            Cin_t //= 2
        else:
            break   # best effort (only reachable for odd, very large channel counts)

    # Megacore guard (v7x has 2 TensorCores): make sure the parallel grid has
    # at least 2 steps to shard, if the problem allows it.
    if (B // B_t) * (Mp // M_t) * (Cout // Cout_t) < 2:
        if M_t % 256 == 0:
            M_t //= 2
        elif B_t > 1:
            B_t = _largest_divisor(B, tuple(range(B_t // 2, 0, -1)))
        elif Cout_t % 16 == 0:
            Cout_t //= 2

    return B_t, Cin_t, Cout_t, M_t


def compl_mul2d_pallas(x_ri, w_ri):
    """x_ri: (2, B, Cin, Mp) f32; w_ri: (2, Cin, Cout, Mp) f32 -> (2, B, Cout, Mp).

    Mp (flattened + padded mode axis) must be a multiple of 128 (lane-dense)."""
    _, B, Cin, Mp = x_ri.shape
    Cout = w_ri.shape[2]
    assert Mp % 128 == 0, "mode axis must be padded to a multiple of 128"

    # Generation-aware VMEM capacity (64 MiB on v7x, 128 MiB on v5e/v6e).
    try:
        info = pltpu.get_tpu_info()
        vmem_cap = int(getattr(info, "vmem_capacity_bytes", 64 * 1024 * 1024))
    except Exception:
        vmem_cap = 64 * 1024 * 1024          # conservative fallback (v7x-sized)

    B_t, Cin_t, Cout_t, M_t = _select_tiles(B, Cin, Cout, Mp, vmem_cap)
    grid = (B // B_t, Mp // M_t, Cout // Cout_t, Cin // Cin_t)
    vmem_limit = min(int(vmem_cap * 0.625), 96 * 1024 * 1024)

    return pl.pallas_call(
        _compl_mul_kernel,
        out_shape=jax.ShapeDtypeStruct((2, B, Cout, Mp), jnp.float32),
        grid_spec=pltpu.PrefetchScalarGridSpec(
            num_scalar_prefetch=0,
            grid=grid,
            in_specs=[
                # x block index is independent of the Cout grid axis -> with the
                # grid ordered (b, m, o, c) and Cin in one block, the x tile is
                # fetched once per (b, m) and reused across all o steps.
                pl.BlockSpec((2, B_t, Cin_t, M_t),
                             lambda b, m, o, c: (0, b, c, m)),
                pl.BlockSpec((2, Cin_t, Cout_t, M_t),
                             lambda b, m, o, c: (0, c, o, m)),
            ],
            out_specs=pl.BlockSpec((2, B_t, Cout_t, M_t),
                                   lambda b, m, o, c: (0, b, o, m)),
        ),
        compiler_params=pltpu.CompilerParams(
            dimension_semantics=("parallel", "parallel", "parallel", "arbitrary"),
            vmem_limit_bytes=vmem_limit,
        ),
    )(x_ri, w_ri)


# ----------------------------------------------------------------------------
# Module
# ----------------------------------------------------------------------------
class SpectralConv2d:
    """JAX/Pallas port of the PyTorch SpectralConv2d module (forward pass)."""

    def __init__(self, in_channels, out_channels, modes1, modes2, key):
        self.in_channels = in_channels
        self.out_channels = out_channels
        self.modes1 = modes1
        self.modes2 = modes2
        scale = 1.0 / (in_channels * out_channels)
        k1, k2, k3, k4 = jax.random.split(key, 4)
        shape = (in_channels, out_channels, modes1, modes2)
        # torch.rand(..., dtype=cfloat) draws real and imag parts ~ U[0,1).
        self.weights1 = (scale * (jax.random.uniform(k1, shape, jnp.float32)
                                  + 1j * jax.random.uniform(k2, shape, jnp.float32))
                         ).astype(jnp.complex64)
        self.weights2 = (scale * (jax.random.uniform(k3, shape, jnp.float32)
                                  + 1j * jax.random.uniform(k4, shape, jnp.float32))
                         ).astype(jnp.complex64)

        # Precompute the fused real/imag weight slab ONCE (not per forward call).
        M = modes1 * modes2
        M2 = 2 * M                                    # top block + bottom block fused
        Mp = ((M2 + 127) // 128) * 128                # lane-dense padding
        self._M, self._M2, self._Mp = M, M2, Mp
        w_cat = jnp.concatenate(
            [self.weights1.reshape(in_channels, out_channels, M),
             self.weights2.reshape(in_channels, out_channels, M)],
            axis=-1)                                  # (Cin, Cout, 2M)
        w_ri = jnp.stack([jnp.real(w_cat), jnp.imag(w_cat)], axis=0).astype(jnp.float32)
        if Mp > M2:
            w_ri = jnp.pad(w_ri, ((0, 0), (0, 0), (0, 0), (0, Mp - M2)))
        self._w_ri = w_ri                             # (2, Cin, Cout, Mp)

    def __call__(self, x):
        B, Cin, H, W = x.shape
        m1, m2 = self.modes1, self.modes2
        Cout = self.out_channels
        M, M2, Mp = self._M, self._M2, self._Mp

        # TODO(synk): rfft2/irfft2 stay in XLA; there is no Pallas TPU FFT primitive.
        x_ft = jnp.fft.rfft2(x)                       # (B, Cin, H, W//2+1) complex64
        Wf = W // 2 + 1

        # Fuse the two retained mode blocks along the flattened mode axis
        # (the contraction is elementwise in the mode index, so this is exact).
        x_top = x_ft[:, :, :m1, :m2].reshape(B, Cin, M)
        x_bot = x_ft[:, :, -m1:, :m2].reshape(B, Cin, M)
        x_cat = jnp.concatenate([x_top, x_bot], axis=-1)             # (B, Cin, 2M)
        x_ri = jnp.stack([jnp.real(x_cat), jnp.imag(x_cat)], axis=0).astype(jnp.float32)
        if Mp > M2:
            x_ri = jnp.pad(x_ri, ((0, 0), (0, 0), (0, 0), (0, Mp - M2)))

        out_ri = compl_mul2d_pallas(x_ri, self._w_ri)                # (2, B, Cout, Mp)
        out_ri = out_ri[:, :, :, :M2]
        out_c = jax.lax.complex(out_ri[0], out_ri[1])                # (B, Cout, 2M) c64
        top = out_c[:, :, :M].reshape(B, Cout, m1, m2)
        bot = out_c[:, :, M:].reshape(B, Cout, m1, m2)

        # If 2*modes1 > H the two writes overlap; the PyTorch reference overwrites
        # identically, so parity is preserved.
        out_ft = jnp.zeros((B, Cout, H, Wf), dtype=jnp.complex64)
        out_ft = out_ft.at[:, :, :m1, :m2].set(top)
        out_ft = out_ft.at[:, :, -m1:, :m2].set(bot)
        return jnp.fft.irfft2(out_ft, s=(H, W))                      # (B, Cout, H, W) f32


# ----------------------------------------------------------------------------
# Pure-JAX reference (mirrors the PyTorch forward exactly) and self-test
# ----------------------------------------------------------------------------
def _reference_forward(mod, x):
    B, C, H, W = x.shape
    x_ft = jnp.fft.rfft2(x)
    Wf = W // 2 + 1
    out_ft = jnp.zeros((B, mod.out_channels, H, Wf), dtype=jnp.complex64)
    out_ft = out_ft.at[:, :, : mod.modes1, : mod.modes2].set(
        jnp.einsum('bixy,ioxy->boxy',
                   x_ft[:, :, : mod.modes1, : mod.modes2], mod.weights1))
    out_ft = out_ft.at[:, :, -mod.modes1:, : mod.modes2].set(
        jnp.einsum('bixy,ioxy->boxy',
                   x_ft[:, :, -mod.modes1:, : mod.modes2], mod.weights2))
    return jnp.fft.irfft2(out_ft, s=(H, W))


if __name__ == "__main__":
    key = jax.random.PRNGKey(0)

    configs = [
        # (B, Cin, Cout, H, W, modes1, modes2)
        (2, 4, 4, 16, 16, 4, 4),      # module-consistent small config
        (4, 8, 16, 32, 32, 8, 8),     # exercises multi-step grid / batch tiling
    ]

    ok = True
    for idx, (B, Cin, Cout, H, W, m1, m2) in enumerate(configs):
        kx, kw, key = jax.random.split(key, 3)
        x = jax.random.normal(kx, (B, Cin, H, W), dtype=jnp.float32)
        layer = SpectralConv2d(Cin, Cout, m1, m2, kw)

        out = jax.block_until_ready(layer(x))
        ref = jax.block_until_ready(_reference_forward(layer, x))

        assert out.shape == (B, Cout, H, W)
        err = jnp.max(jnp.abs(out - ref))
        if not jnp.allclose(out, ref, atol=1e-4, rtol=1e-4):
            ok = False
            print(f"config {idx}: max abs err {err}")

    assert ok
    print("KERNEL_OK")
</pallas_src>

<mosaic_0001>
module attributes {stable_mosaic.version = 11 : i64} {
  func.func @_compl_mul_kernel(%arg0: i32, %arg1: i32, %arg2: i32, %arg3: i32, %arg4: memref<2x1x4x128xf32, #tpu.memory_space<vmem>>, %arg5: memref<2x4x4x128xf32, #tpu.memory_space<vmem>>, %arg6: memref<2x1x4x128xf32, #tpu.memory_space<vmem>>) attributes {dimension_semantics = [#tpu.dimension_semantics<parallel>, #tpu.dimension_semantics<parallel>, #tpu.dimension_semantics<parallel>, #tpu.dimension_semantics<arbitrary>], iteration_bounds = array<i64: 2, 1, 1, 1>, scalar_prefetch = 0 : i64, scratch_operands = 0 : i64, tpu.core_type = #tpu.core_type<tc>, window_params = [{transform_indices = @transform_0, window_bounds = array<i64: 2, 1, 4, 128>}, {transform_indices = @transform_1, window_bounds = array<i64: 2, 4, 4, 128>}, {transform_indices = @transform_2, window_bounds = array<i64: 2, 1, 4, 128>}]} {
    %c0_i32 = arith.constant 0 : i32
    %0 = arith.cmpi eq, %arg3, %c0_i32 : i32
    %c0_i32_0 = arith.constant 0 : i32
    %1 = arith.cmpi sgt, %arg3, %c0_i32_0 : i32
    %cst = arith.constant 0.000000e+00 : f32
    %2 = vector.broadcast %cst : f32 to vector<4x128xf32>
    %c0 = arith.constant 0 : index
    %c0_1 = arith.constant 0 : index
    %c0_2 = arith.constant 0 : index
    %c0_3 = arith.constant 0 : index
    %3 = vector.load %arg4[%c0, %c0_1, %c0_2, %c0_3] : memref<2x1x4x128xf32, #tpu.memory_space<vmem>>, vector<1x1x1x128xf32>
    %4 = vector.shape_cast %3 : vector<1x1x1x128xf32> to vector<1x128xf32>
    %c1 = arith.constant 1 : index
    %c0_4 = arith.constant 0 : index
    %c0_5 = arith.constant 0 : index
    %c0_6 = arith.constant 0 : index
    %5 = vector.load %arg4[%c1, %c0_4, %c0_5, %c0_6] : memref<2x1x4x128xf32, #tpu.memory_space<vmem>>, vector<1x1x1x128xf32>
    %6 = vector.shape_cast %5 : vector<1x1x1x128xf32> to vector<1x128xf32>
    %c0_7 = arith.constant 0 : index
    %c0_8 = arith.constant 0 : index
    %c0_9 = arith.constant 0 : index
    %c0_10 = arith.constant 0 : index
    %7 = vector.load %arg5[%c0_7, %c0_8, %c0_9, %c0_10] : memref<2x4x4x128xf32, #tpu.memory_space<vmem>>, vector<1x1x4x128xf32>
    %8 = vector.shape_cast %7 : vector<1x1x4x128xf32> to vector<4x128xf32>
    %c1_11 = arith.constant 1 : index
    %c0_12 = arith.constant 0 : index
    %c0_13 = arith.constant 0 : index
    %c0_14 = arith.constant 0 : index
    %9 = vector.load %arg5[%c1_11, %c0_12, %c0_13, %c0_14] : memref<2x4x4x128xf32, #tpu.memory_space<vmem>>, vector<1x1x4x128xf32>
    %10 = vector.shape_cast %9 : vector<1x1x4x128xf32> to vector<4x128xf32>
    %11 = vector.broadcast %4 : vector<1x128xf32> to vector<4x128xf32>
    %12 = arith.mulf %11, %8 : vector<4x128xf32>
    %13 = vector.broadcast %6 : vector<1x128xf32> to vector<4x128xf32>
    %14 = arith.mulf %13, %10 : vector<4x128xf32>
    %15 = arith.subf %12, %14 : vector<4x128xf32>
    %16 = arith.addf %2, %15 : vector<4x128xf32>
    %17 = vector.broadcast %4 : vector<1x128xf32> to vector<4x128xf32>
    %18 = arith.mulf %17, %10 : vector<4x128xf32>
    %19 = vector.broadcast %6 : vector<1x128xf32> to vector<4x128xf32>
    %20 = arith.mulf %19, %8 : vector<4x128xf32>
    %21 = arith.addf %18, %20 : vector<4x128xf32>
    %22 = arith.addf %2, %21 : vector<4x128xf32>
    %c0_15 = arith.constant 0 : index
    %c0_16 = arith.constant 0 : index
    %c1_17 = arith.constant 1 : index
    %c0_18 = arith.constant 0 : index
    %23 = vector.load %arg4[%c0_15, %c0_16, %c1_17, %c0_18] : memref<2x1x4x128xf32, #tpu.memory_space<vmem>>, vector<1x1x1x128xf32>
    %24 = vector.shape_cast %23 : vector<1x1x1x128xf32> to vector<1x128xf32>
    %c1_19 = arith.constant 1 : index
    %c0_20 = arith.constant 0 : index
    %c1_21 = arith.constant 1 : index
    %c0_22 = arith.constant 0 : index
    %25 = vector.load %arg4[%c1_19, %c0_20, %c1_21, %c0_22] : memref<2x1x4x128xf32, #tpu.memory_space<vmem>>, vector<1x1x1x128xf32>
    %26 = vector.shape_cast %25 : vector<1x1x1x128xf32> to vector<1x128xf32>
    %c0_23 = arith.constant 0 : index
    %c1_24 = arith.constant 1 : index
    %c0_25 = arith.constant 0 : index
    %c0_26 = arith.constant 0 : index
    %27 = vector.load %arg5[%c0_23, %c1_24, %c0_25, %c0_26] : memref<2x4x4x128xf32, #tpu.memory_space<vmem>>, vector<1x1x4x128xf32>
    %28 = vector.shape_cast %27 : vector<1x1x4x128xf32> to vector<4x128xf32>
    %c1_27 = arith.constant 1 : index
    %c1_28 = arith.constant 1 : index
    %c0_29 = arith.constant 0 : index
    %c0_30 = arith.constant 0 : index
    %29 = vector.load %arg5[%c1_27, %c1_28, %c0_29, %c0_30] : memref<2x4x4x128xf32, #tpu.memory_space<vmem>>, vector<1x1x4x128xf32>
    %30 = vector.shape_cast %29 : vector<1x1x4x128xf32> to vector<4x128xf32>
    %31 = vector.broadcast %24 : vector<1x128xf32> to vector<4x128xf32>
    %32 = arith.mulf %31, %28 : vector<4x128xf32>
    %33 = vector.broadcast %26 : vector<1x128xf32> to vector<4x128xf32>
    %34 = arith.mulf %33, %30 : vector<4x128xf32>
    %35 = arith.subf %32, %34 : vector<4x128xf32>
    %36 = arith.addf %16, %35 : vector<4x128xf32>
    %37 = vector.broadcast %24 : vector<1x128xf32> to vector<4x128xf32>
    %38 = arith.mulf %37, %30 : vector<4x128xf32>
    %39 = vector.broadcast %26 : vector<1x128xf32> to vector<4x128xf32>
    %40 = arith.mulf %39, %28 : vector<4x128xf32>
    %41 = arith.addf %38, %40 : vector<4x128xf32>
    %42 = arith.addf %22, %41 : vector<4x128xf32>
    %c0_31 = arith.constant 0 : index
    %c0_32 = arith.constant 0 : index
    %c2 = arith.constant 2 : index
    %c0_33 = arith.constant 0 : index
    %43 = vector.load %arg4[%c0_31, %c0_32, %c2, %c0_33] : memref<2x1x4x128xf32, #tpu.memory_space<vmem>>, vector<1x1x1x128xf32>
    %44 = vector.shape_cast %43 : vector<1x1x1x128xf32> to vector<1x128xf32>
    %c1_34 = arith.constant 1 : index
    %c0_35 = arith.constant 0 : index
    %c2_36 = arith.constant 2 : index
    %c0_37 = arith.constant 0 : index
    %45 = vector.load %arg4[%c1_34, %c0_35, %c2_36, %c0_37] : memref<2x1x4x128xf32, #tpu.memory_space<vmem>>, vector<1x1x1x128xf32>
    %46 = vector.shape_cast %45 : vector<1x1x1x128xf32> to vector<1x128xf32>
    %c0_38 = arith.constant 0 : index
    %c2_39 = arith.constant 2 : index
    %c0_40 = arith.constant 0 : index
    %c0_41 = arith.constant 0 : index
    %47 = vector.load %arg5[%c0_38, %c2_39, %c0_40, %c0_41] : memref<2x4x4x128xf32, #tpu.memory_space<vmem>>, vector<1x1x4x128xf32>
    %48 = vector.shape_cast %47 : vector<1x1x4x128xf32> to vector<4x128xf32>
    %c1_42 = arith.constant 1 : index
    %c2_43 = arith.constant 2 : index
    %c0_44 = arith.constant 0 : index
    %c0_45 = arith.constant 0 : index
    %49 = vector.load %arg5[%c1_42, %c2_43, %c0_44, %c0_45] : memref<2x4x4x128xf32, #tpu.memory_space<vmem>>, vector<1x1x4x128xf32>
    %50 = vector.shape_cast %49 : vector<1x1x4x128xf32> to vector<4x128xf32>
    %51 = vector.broadcast %44 : vector<1x128xf32> to vector<4x128xf32>
    %52 = arith.mulf %51, %48 : vector<4x128xf32>
    %53 = vector.broadcast %46 : vector<1x128xf32> to vector<4x128xf32>
    %54 = arith.mulf %53, %50 : vector<4x128xf32>
    %55 = arith.subf %52, %54 : vector<4x128xf32>
    %56 = arith.addf %36, %55 : vector<4x128xf32>
    %57 = vector.broadcast %44 : vector<1x128xf32> to vector<4x128xf32>
    %58 = arith.mulf %57, %50 : vector<4x128xf32>
    %59 = vector.broadcast %46 : vector<1x128xf32> to vector<4x128xf32>
    %60 = arith.mulf %59, %48 : vector<4x128xf32>
    %61 = arith.addf %58, %60 : vector<4x128xf32>
    %62 = arith.addf %42, %61 : vector<4x128xf32>
    %c0_46 = arith.constant 0 : index
    %c0_47 = arith.constant 0 : index
    %c3 = arith.constant 3 : index
    %c0_48 = arith.constant 0 : index
    %63 = vector.load %arg4[%c0_46, %c0_47, %c3, %c0_48] : memref<2x1x4x128xf32, #tpu.memory_space<vmem>>, vector<1x1x1x128xf32>
    %64 = vector.shape_cast %63 : vector<1x1x1x128xf32> to vector<1x128xf32>
    %c1_49 = arith.constant 1 : index
    %c0_50 = arith.constant 0 : index
    %c3_51 = arith.constant 3 : index
    %c0_52 = arith.constant 0 : index
    %65 = vector.load %arg4[%c1_49, %c0_50, %c3_51, %c0_52] : memref<2x1x4x128xf32, #tpu.memory_space<vmem>>, vector<1x1x1x128xf32>
    %66 = vector.shape_cast %65 : vector<1x1x1x128xf32> to vector<1x128xf32>
    %c0_53 = arith.constant 0 : index
    %c3_54 = arith.constant 3 : index
    %c0_55 = arith.constant 0 : index
    %c0_56 = arith.constant 0 : index
    %67 = vector.load %arg5[%c0_53, %c3_54, %c0_55, %c0_56] : memref<2x4x4x128xf32, #tpu.memory_space<vmem>>, vector<1x1x4x128xf32>
    %68 = vector.shape_cast %67 : vector<1x1x4x128xf32> to vector<4x128xf32>
    %c1_57 = arith.constant 1 : index
    %c3_58 = arith.constant 3 : index
    %c0_59 = arith.constant 0 : index
    %c0_60 = arith.constant 0 : index
    %69 = vector.load %arg5[%c1_57, %c3_58, %c0_59, %c0_60] : memref<2x4x4x128xf32, #tpu.memory_space<vmem>>, vector<1x1x4x128xf32>
    %70 = vector.shape_cast %69 : vector<1x1x4x128xf32> to vector<4x128xf32>
    %71 = vector.broadcast %64 : vector<1x128xf32> to vector<4x128xf32>
    %72 = arith.mulf %71, %68 : vector<4x128xf32>
    %73 = vector.broadcast %66 : vector<1x128xf32> to vector<4x128xf32>
    %74 = arith.mulf %73, %70 : vector<4x128xf32>
    %75 = arith.subf %72, %74 : vector<4x128xf32>
    %76 = arith.addf %56, %75 : vector<4x128xf32>
    %77 = vector.broadcast %64 : vector<1x128xf32> to vector<4x128xf32>
    %78 = arith.mulf %77, %70 : vector<4x128xf32>
    %79 = vector.broadcast %66 : vector<1x128xf32> to vector<4x128xf32>
    %80 = arith.mulf %79, %68 : vector<4x128xf32>
    %81 = arith.addf %78, %80 : vector<4x128xf32>
    %82 = arith.addf %62, %81 : vector<4x128xf32>
    %83 = arith.extui %0 : i1 to i32
    %c0_i32_61 = arith.constant 0 : i32
    %84 = arith.cmpi ne, %83, %c0_i32_61 : i32
    scf.if %84 {
      %c0_63 = arith.constant 0 : index
      %c0_64 = arith.constant 0 : index
      %c0_65 = arith.constant 0 : index
      %c0_66 = arith.constant 0 : index
      %87 = vector.load %arg6[%c0_63, %c0_64, %c0_65, %c0_66] : memref<2x1x4x128xf32, #tpu.memory_space<vmem>>, vector<1x1x4x128xf32>
      %88 = vector.shape_cast %87 : vector<1x1x4x128xf32> to vector<4x128xf32>
      %89 = vector.shape_cast %76 : vector<4x128xf32> to vector<1x1x4x128xf32>
      tpu.vector_store %arg6[%c0_63, %c0_64, %c0_65, %c0_66], %89 {strides = array<i32>} : memref<2x1x4x128xf32, #tpu.memory_space<vmem>>, vector<1x1x4x128xf32>,
      %c1_67 = arith.constant 1 : index
      %c0_68 = arith.constant 0 : index
      %c0_69 = arith.constant 0 : index
      %c0_70 = arith.constant 0 : index
      %90 = vector.load %arg6[%c1_67, %c0_68, %c0_69, %c0_70] : memref<2x1x4x128xf32, #tpu.memory_space<vmem>>, vector<1x1x4x128xf32>
      %91 = vector.shape_cast %90 : vector<1x1x4x128xf32> to vector<4x128xf32>
      %92 = vector.shape_cast %82 : vector<4x128xf32> to vector<1x1x4x128xf32>
      tpu.vector_store %arg6[%c1_67, %c0_68, %c0_69, %c0_70], %92 {strides = array<i32>} : memref<2x1x4x128xf32, #tpu.memory_space<vmem>>, vector<1x1x4x128xf32>,
    } else {
    }
    %85 = arith.extui %1 : i1 to i32
    %c0_i32_62 = arith.constant 0 : i32
    %86 = arith.cmpi ne, %85, %c0_i32_62 : i32
    scf.if %86 {
      %c0_63 = arith.constant 0 : index
      %c0_64 = arith.constant 0 : index
      %c0_65 = arith.constant 0 : index
      %c0_66 = arith.constant 0 : index
      %87 = vector.load %arg6[%c0_63, %c0_64, %c0_65, %c0_66] : memref<2x1x4x128xf32, #tpu.memory_space<vmem>>, vector<1x1x4x128xf32>
      %88 = vector.shape_cast %87 : vector<1x1x4x128xf32> to vector<4x128xf32>
      %89 = arith.addf %88, %76 : vector<4x128xf32>
      %c0_67 = arith.constant 0 : index
      %c0_68 = arith.constant 0 : index
      %c0_69 = arith.constant 0 : index
      %c0_70 = arith.constant 0 : index
      %90 = vector.load %arg6[%c0_67, %c0_68, %c0_69, %c0_70] : memref<2x1x4x128xf32, #tpu.memory_space<vmem>>, vector<1x1x4x128xf32>
      %91 = vector.shape_cast %90 : vector<1x1x4x128xf32> to vector<4x128xf32>
      %92 = vector.shape_cast %89 : vector<4x128xf32> to vector<1x1x4x128xf32>
      tpu.vector_store %arg6[%c0_67, %c0_68, %c0_69, %c0_70], %92 {strides = array<i32>} : memref<2x1x4x128xf32, #tpu.memory_space<vmem>>, vector<1x1x4x128xf32>,
      %c1_71 = arith.constant 1 : index
      %c0_72 = arith.constant 0 : index
      %c0_73 = arith.constant 0 : index
      %c0_74 = arith.constant 0 : index
      %93 = vector.load %arg6[%c1_71, %c0_72, %c0_73, %c0_74] : memref<2x1x4x128xf32, #tpu.memory_space<vmem>>, vector<1x1x4x128xf32>
      %94 = vector.shape_cast %93 : vector<1x1x4x128xf32> to vector<4x128xf32>
      %95 = arith.addf %94, %82 : vector<4x128xf32>
      %c1_75 = arith.constant 1 : index
      %c0_76 = arith.constant 0 : index
      %c0_77 = arith.constant 0 : index
      %c0_78 = arith.constant 0 : index
      %96 = vector.load %arg6[%c1_75, %c0_76, %c0_77, %c0_78] : memref<2x1x4x128xf32, #tpu.memory_space<vmem>>, vector<1x1x4x128xf32>
      %97 = vector.shape_cast %96 : vector<1x1x4x128xf32> to vector<4x128xf32>
      %98 = vector.shape_cast %95 : vector<4x128xf32> to vector<1x1x4x128xf32>
      tpu.vector_store %arg6[%c1_75, %c0_76, %c0_77, %c0_78], %98 {strides = array<i32>} : memref<2x1x4x128xf32, #tpu.memory_space<vmem>>, vector<1x1x4x128xf32>,
    } else {
    }
    return
  }
  func.func @transform_0(%arg0: i32, %arg1: i32, %arg2: i32, %arg3: i32) -> (i32, i32, i32, i32) {
    %c0_i32 = arith.constant 0 : i32
    %c0_i32_0 = arith.constant 0 : i32
    return %c0_i32, %arg0, %arg3, %arg1 : i32, i32, i32, i32
  }
  func.func @transform_1(%arg0: i32, %arg1: i32, %arg2: i32, %arg3: i32) -> (i32, i32, i32, i32) {
    %c0_i32 = arith.constant 0 : i32
    %c0_i32_0 = arith.constant 0 : i32
    return %c0_i32, %arg3, %arg2, %arg1 : i32, i32, i32, i32
  }
  func.func @transform_2(%arg0: i32, %arg1: i32, %arg2: i32, %arg3: i32) -> (i32, i32, i32, i32) {
    %c0_i32 = arith.constant 0 : i32
    %c0_i32_0 = arith.constant 0 : i32
    return %c0_i32, %arg0, %arg2, %arg1 : i32, i32, i32, i32
  }
}

</mosaic_0001>

<bundles_post_ra>
// kernel: tpu_custom_call.1
= control target key start
LH: loop header
LB: loop body
LE: loop exit
PB: predicated region body
PF: predicated region fallthrough
CT: control target
= control target key end

     0   :  { %7 = vsyncpa [#allocation3], 0  ;;  %s962_s0 = inlined_call_operand.hbm [shape: f32[2,2,4,128], index: 0, kind: input, shape index: {}]   ;;  %s963_s1 = inlined_call_operand.hbm [shape: f32[2,4,4,128], index: 1, kind: input, shape index: {}]   ;;  %s964_s2 = inlined_call_operand.hbm [shape: f32[2,2,4,128], index: 2, kind: output, shape index: {}]  }
   0x1   :  { %9 = vsyncpa [#allocation3 + $0x1], 0 }
   0x2   :  { %10 = vsyncpa [#allocation6], 0 }
   0x3   :  { %11 = vsyncpa [#allocation4], 0 }
   0x4   :  { %13 = vsyncpa [#allocation4 + $0x1], 0  ;;  %s733_s9 = smov 0   ;;  %s735_s10 = smov 0  }
   0x5   :  { %s737_s11 = smov 0   ;;  %s739_s12 = smov 0  }
   0x6   :  { %s741_s13 = smov 0   ;;  %s743_s14 = smov 0  }
   0x7 LB: > { %s454_s15 = sadd.s32 4294967295, %s707_s14   ;;  %s455_s16 = sadd.s32 4294967294, %s707_s14   ;;  %s707_s14 = sphi %s743_s14, %s19_s14   ;;  %s703_s13 = sphi %s741_s13, %s990_s13   ;;  %s699_s12 = sphi %s739_s12, %s989_s12   ;;  %s695_s11 = sphi %s737_s11, %s988_s11   ;;  %s691_s10 = sphi %s735_s10, %s987_s10   ;;  %s687_s9 = sphi %s733_s9, %s986_s9  }
   0x8   : > { %p63_p0 = scmp.ne.s32.totalorder %s695_s11, %s691_s10  ;;  %p64_p1 = scmp.eq.s32.totalorder %s707_s14, 0 }
   0x9   : > { %p69_p2 = scmp.ne.s32.totalorder %s691_s10, %s687_s9  ;;  %p770_p3 = scmp.eq.s32.totalorder %s454_s15, 0 }
   0xa   : > { %p774_p4 = por %p64_p1, %p63_p0  ;;  %p127_p5 = scmp.eq.s32.totalorder %s454_s15, 1 }
   0xb   : > { %s971_s17 = scalar_select %p770_p3, 1, 0 }
   0xc   : > { %p780_p6 = por %p770_p3, %p69_p2  ;;  %p133_p7 = scmp.eq.s32.totalorder %s455_s16, 1 }
   0xd   : > { %p784_p8 = por %p127_p5, %p63_p0  ;;  %p456_p9 = scmp.ge.s32.totalorder %s707_s14, 1 }
   0xe   : > { %s973_s19 = scalar_select %p780_p6, 1, 0 }
   0xf   : > { %s974_s20 = scalar_select %p784_p8, 1, 0 }
  0x10   : > { %p789_p10 = por %p133_p7, %p69_p2  ;;  %p140_p11 = scmp.lt.s32.totalorder %s707_s14, 3 }
  0x11   : > { %s709_s23 = smov [#allocation5]   ;;  %p505_p1 = scmp.lt.s32.totalorder %s707_s14, 2 }
  0x12   : > { %s975_s21 = scalar_select %p789_p10, 1, 0 }
  0x13   : > { %p794_p12 = pnand %p456_p9, %p140_p11  ;;  %s157_s24 = sshll.u32 %s709_s23, 4  ;;  %s798_s24 = int_to_ptr.vmem [resolvable:$true] %s157_s24 }
  0x14   : > { %p812_p2 = pnand %p505_p1, %p774_p4  ;;  %s45_s27 = sadd.s32 1, %s703_s13 }
  0x15   : > { %s976_s22 = scalar_select %p794_p12, 1, 0 }
  0x16   : > { %p492_p13 = pneg %p794_p12  ;;  %s563_s30 = scalar_lea.hbm %s963_s1, 512 }
  0x17   : > { %s978_s26 = scalar_select %p812_p2, 1, 0 }
  0x18   : > { %p806_p5 = pnand %p492_p13, %p770_p3  ;;  %p564_p7 = scmp.ne.s32.totalorder %s963_s1, %s563_s30 }
  0x19   : > { %p570_p4 = scmp.lt.u32.totalorder %s563_s30, %s963_s1 }
  0x1a   : > { %p565_p9 = pneg %p806_p5 }
  0x1c   : > { %p566_p11 = pnand %p565_p9, %p564_p7 }
  0x1e   : > { %p567_p13 = pneg %p566_p11 }
  0x20   : > { %p572_p1 = pnand %p570_p4, %p567_p13 }
  0x22   : > { %575 = shalt.err (!%p572_p1)
}
  0x23   : > { %s576_s7 = scalar_lea.vmem %s798_s24, 512  ;;  %p584_p3 = scmp.lt.s32.totalorder %s798_s24, %s798_s24 }
  0x24   : > { %p577_p0 = scmp.ne.s32.totalorder %s798_s24, %s576_s7  ;;  %p585_p6 = scmp.lt.s32.totalorder %s576_s7, %s576_s7 }
  0x26   : > { %p579_p10 = pnand %p577_p0, %p565_p9  ;;  %p586_p12 = por %p585_p6, %p584_p3 }
  0x28   : > { %p580_p8 = pneg %p579_p10 }
  0x2a   : > { %p587_p2 = pnand %p586_p12, %p580_p8 }
  0x2c   : > { %590 = shalt.err (!%p587_p2)
}
  0x2d   : > { %s710_s8 = smov 64   ;;  %s711_s15 = smov 4  }
  0x2e   : > { %495 = dma.hbm_to_vmem [thread:$0]  (!%p806_p5), %s963_s1, 512, %s798_s24, [#allocation6], %s710_s8, %s710_s8, %s711_s15  }
  0x2f   : > { %p47_p3 = scmp.ge.s32.totalorder %s45_s27, 2  ;;  %s56_s23 = sadd.s32 1, %s695_s11 }
  0x30   : > { %s171_s28 = sand.u32 1, %s695_s11   ;;  %s460_s3 = sshll.u32 %s703_s13, 6 }
  0x31   : > { %s992_s27 = smov (%p47_p3, %s45_s27), 0  ;;  %s459_s29 = sshll.u32 %s171_s28, 3 }
  0x32   : > { %s49_s30 = ssub.s32 %s703_s13, %s992_s27  ;;  %s851_s5 = scalar_lea.hbm %s962_s0, %s460_s3 }
  0x33   : > { %p54_p6 = scmp.eq.s32.totalorder %s49_s30, 0  ;;  %s175_s24 = scalar_lea.vmem [#allocation2], %s459_s29 }
  0x34   : > { %s183_s6 = sshll.u32 %s175_s24, 4  ;;  %s858_s16 = scalar_lea.sflag [#allocation3], %s171_s28  ;;  %s856_s6 = int_to_ptr.vmem [resolvable:$true] %s183_s6 }
  0x35   : > { %s854_s7 = scalar_select %p54_p6, %s695_s11, %s56_s23  }
  0x36   : > { %s591_s18 = scalar_lea.hbm %s851_s5, 128  ;;  %p979_p10 = scmp.ne.s32.totalorder %s978_s26, 0 }
  0x37   : > { %p592_p8 = scmp.ne.s32.totalorder %s851_s5, %s591_s18  ;;  %s596_s25 = scalar_lea.hbm %s962_s0, 256 }
  0x38   : > { %p593_p12 = pneg %p979_p10  ;;  %p597_p2 = scmp.lt.u32.totalorder %s851_s5, %s962_s0 }
  0x39   : > { %p598_p7 = scmp.lt.u32.totalorder %s596_s25, %s591_s18  ;;  %p600_p11 = scmp.lt.u32.totalorder %s591_s18, %s851_s5 }
  0x3a   : > { %p594_p0 = pnand %p593_p12, %p592_p8 }
  0x3b   : > { %p599_p9 = por %p598_p7, %p597_p2 }
  0x3c   : > { %p595_p5 = pneg %p594_p0 }
  0x3d   : > { %p601_p13 = por %p600_p11, %p599_p9 }
  0x3f   : > { %p602_p4 = pnand %p601_p13, %p595_p5 }
  0x41   : > { %605 = shalt.err (!%p602_p4)
}
  0x42   : > { %s606_s23 = scalar_lea.vmem %s856_s6, 128  ;;  %s712_s28 = smov [#allocation2]  }
  0x43   : > { %p607_p1 = scmp.ne.s32.totalorder %s856_s6, %s606_s23  ;;  %s611_s24 = sshll.u32 %s712_s28, 4  ;;  %s612_s24 = int_to_ptr.vmem [resolvable:$false] %s611_s24 }
  0x44   : > { %s613_s30 = scalar_lea.vmem %s612_s24, 256  ;;  %p614_p8 = scmp.lt.s32.totalorder %s856_s6, %s612_s24 }
  0x45   : > { %p609_p3 = pnand %p607_p1, %p593_p12  ;;  %p615_p0 = scmp.lt.s32.totalorder %s613_s30, %s606_s23 }
  0x47   : > { %p610_p6 = pneg %p609_p3  ;;  %p616_p2 = por %p615_p0, %p614_p8 }
  0x49   : > { %p617_p7 = pnand %p616_p2, %p610_p6 }
  0x4b   : > { %620 = shalt.err (!%p617_p7)
}
  0x4c   : > { %s713_s18 = smov 128   ;;  %p980_p12 = scmp.ne.s32.totalorder %s976_s22, 0 }
  0x4d   : > { %499 = dma.hbm_to_vmem [thread:$0]  (!%p979_p10), %s851_s5, 128, %s856_s6, %s858_s16, %s713_s18, %s710_s8, %s711_s15  }
  0x4e   : > { %195 = sbr.rel (%p980_p12) target bundleno = 122 (0x7a), region = 28  ;;  %s891_s3 = sand.u32 (!%p980_p12), 1, %s691_s10  }
  0x4f   : > { %s462_s25 = sshll.u32 (!%p980_p12), %s891_s3, 3  ;;  %s198_s29 = scalar_lea.sflag (!%p980_p12), [#allocation3], %s891_s3 }
  0x50   : > { %s201_s26 = scalar_lea.vmem (!%p980_p12), [#allocation2], %s462_s25  ;;  %p981_p5 = scmp.ne.s32.totalorder (!%p980_p12), %s973_s19, 0 }
  0x55   : > { %674 = dma.done.wait (%p981_p5), %s198_s29, 128  }
  0x56   : > { %676 = vsyncadd (%p981_p5), %s198_s29, 4294967168  ;;  %p982_p10 = scmp.ne.s32.totalorder %s971_s17, 0 }
  0x58   : > { %678 = dma.done.wait (%p982_p10), [#allocation6], 512  }
  0x59   : > { %680 = vsyncadd (%p982_p10), [#allocation6], 4294966784  ;;  %v466_v0 = vld [vmem:[%s201_s26] ss:$0 sm:$0xff]  ;;  %v467_v1 = vld [vmem:[%s201_s26 + $0x4] ss:$0 sm:$0xff] }
  0x5a   : > { %v232_v2 = vld [vmem:[#allocation5] sm:$0xf]  ;;  %v234_v3 = vld [vmem:[#allocation5 + $0x10] sm:$0xf]  ;;  %v470_v6 = vld [vmem:[%s201_s26 + $0x5] ss:$0 sm:$0xff] }
  0x5b   : > { %v239_v4 = vmul.f32 %v466_v0, %v232_v2  ;;  %v469_v5 = vld [vmem:[%s201_s26 + $0x1] ss:$0 sm:$0xff]  ;;  %v248_v7 = vmul.f32 %v467_v1, %v232_v2  ;;  %v244_v8 = vmul.f32 %v467_v1, %v234_v3  ;;  %v254_v9 = vld [vmem:[#allocation5 + $0x4] sm:$0xf]  ;;  %v256_v10 = vld [vmem:[#allocation5 + $0x14] sm:$0xf]  ;;  %v247_v12 = vmul.f32 %v466_v0, %v234_v3 }
  0x5c   : > { %v472_v11 = vld [vmem:[%s201_s26 + $0x2] ss:$0 sm:$0xff]  ;;  %v261_v13 = vmul.f32 %v469_v5, %v254_v9  ;;  %v266_v14 = vmul.f32 %v470_v6, %v256_v10  ;;  %v473_v15 = vld [vmem:[%s201_s26 + $0x6] ss:$0 sm:$0xff]  ;;  %v276_v16 = vld [vmem:[#allocation5 + $0x8] sm:$0xf]  ;;  %v269_v18 = vmul.f32 %v469_v5, %v256_v10  ;;  %v270_v19 = vmul.f32 %v470_v6, %v254_v9 }
  0x5d   : > { %v278_v17 = vld [vmem:[#allocation5 + $0x18] sm:$0xf]  ;;  %v245_v20 = vsub.f32 %v239_v4, %v244_v8  ;;  %v283_v21 = vmul.f32 %v472_v11, %v276_v16  ;;  %v476_v24 = vld [vmem:[%s201_s26 + $0x7] ss:$0 sm:$0xff]  ;;  %v298_v25 = vld [vmem:[#allocation5 + $0xc] sm:$0xf]  ;;  %v249_v26 = vadd.f32 %v248_v7, %v247_v12  ;;  %v292_v34 = vmul.f32 %v473_v15, %v276_v16 }
  0x5e   : > { %v288_v22 = vmul.f32 %v473_v15, %v278_v17  ;;  %v475_v23 = vld [vmem:[%s201_s26 + $0x3] ss:$0 sm:$0xff]  ;;  %v267_v27 = vsub.f32 %v261_v13, %v266_v14  ;;  %v300_v28 = vld [vmem:[#allocation5 + $0x1c] sm:$0xf]  ;;  %v271_v30 = vadd.f32 %v270_v19, %v269_v18  ;;  %v291_v31 = vmul.f32 %v472_v11, %v278_v17  ;;  %s225_s17 = scalar_lea.vmem [#allocation7], %s462_s25  ;;  %s481_s22 = sshll.u32 %s699_s12, 6 }
  0x5f   : > { %v305_v29 = vmul.f32 %v475_v23, %v298_v25  ;;  %v310_v33 = vmul.f32 %v476_v24, %v300_v28  ;;  %v313_v35 = vmul.f32 %v475_v23, %v300_v28  ;;  %s348_s19 = sshll.u32 %s225_s17, 4  ;;  %v314_v38 = vmul.f32 %v476_v24, %v298_v25  ;;  %s913_s5 = scalar_lea.hbm %s964_s2, %s481_s22  ;;  %s908_s19 = int_to_ptr.vmem [resolvable:$true] %s348_s19 }
  0x60   : > { %v289_v32 = vsub.f32 %v283_v21, %v288_v22  ;;  %v268_v36 = vadd.f32 %v267_v27, %v245_v20  ;;  %v272_v37 = vadd.f32 %v271_v30, %v249_v26  ;;  %v293_v40 = vadd.f32 %v292_v34, %v291_v31  ;;  %s334_s6 = scalar_lea.sflag [#allocation4], %s891_s3  ;;  %s621_s16 = scalar_lea.vmem %s908_s19, 128 }
  0x61   : > { %v311_v39 = vsub.f32 %v305_v29, %v310_v33  ;;  %v315_v42 = vadd.f32 %v314_v38, %v313_v35  ;;  %p622_p9 = scmp.ne.s32.totalorder %s908_s19, %s621_s16  ;;  %p983_p11 = scmp.ne.s32.totalorder %s974_s20, 0 }
  0x62   : > { %v290_v41 = vadd.f32 %v289_v32, %v268_v36  ;;  %v294_v43 = vadd.f32 %v293_v40, %v272_v37  ;;  %s714_s12 = smov [#allocation7]  }
  0x63   : > { %p623_p13 = pnand %p622_p9, %p983_p11  ;;  %s625_s4 = sshll.u32 %s714_s12, 4  ;;  %s626_s4 = int_to_ptr.vmem [resolvable:$false] %s625_s4 }
  0x64   : > { %v312_v44 = vadd.f32 %v311_v39, %v290_v41  ;;  %v316_v45 = vadd.f32 %v315_v42, %v294_v43  ;;  %s627_s23 = scalar_lea.vmem %s626_s4, 256  ;;  %p628_p1 = scmp.lt.s32.totalorder %s908_s19, %s626_s4 }
  0x65   : > { %p624_p4 = pneg %p623_p13  ;;  %p629_p3 = scmp.lt.s32.totalorder %s627_s23, %s621_s16 }
  0x66   : > { %320 = vst [vmem:[%s225_s17] sm:$0xf] %v312_v44  ;;  %477 = vst [vmem:[%s225_s17 + $0x4] sm:$0xf] %v316_v45 }
  0x67   : > { %p630_p6 = por %p629_p3, %p628_p1 }
  0x69   : > { %p631_p8 = pnand %p630_p6, %p624_p4 }
  0x6b   : > { %634 = shalt.err (!%p631_p8)
}
  0x6c   : > { %s635_s28 = scalar_lea.hbm %s913_s5, 128  ;;  %s639_s18 = scalar_lea.hbm %s964_s2, 256 }
  0x6d   : > { %p636_p0 = scmp.ne.s32.totalorder %s913_s5, %s635_s28  ;;  %p640_p12 = scmp.lt.u32.totalorder %s913_s5, %s964_s2 }
  0x6e   : > { %p641_p5 = scmp.lt.u32.totalorder %s639_s18, %s635_s28  ;;  %p643_p9 = scmp.lt.u32.totalorder %s635_s28, %s913_s5 }
  0x6f   : > { %p637_p2 = pnand %p636_p0, %p983_p11 }
  0x70   : > { %p642_p10 = por %p641_p5, %p640_p12 }
  0x71   : > { %p638_p7 = pneg %p637_p2 }
  0x72   : > { %p644_p13 = por %p643_p9, %p642_p10 }
  0x74   : > { %p645_p4 = pnand %p644_p13, %p638_p7 }
  0x76   : > { %648 = shalt.err (!%p645_p4)
}
  0x77   : > { %s715_s26 = smov 64   ;;  %s716_s17 = smov 128  }
  0x78   : > { %s717_s22 = smov 4  }
  0x79   : > { %490 = dma.vmem_to_hbm [thread:$0]  (%p983_p11), %s908_s19, 128, %s913_s5, %s334_s6, %s715_s26, %s716_s17, %s717_s22  }
  0x7a PF: > { %s363_s8 = sand.u32 1, %s687_s9   ;;  %p984_p1 = scmp.ne.s32.totalorder %s975_s21, 0 }
  0x7b   : > { %p985_p3 = scmp.ge.s32.totalorder %s707_s14, 2  ;;  %s364_s15 = scalar_lea.sflag [#allocation4], %s363_s8 }
  0x7d   : > { %p501_p6 = pnand %p985_p3, %p984_p1 }
  0x7f   : > { %682 = dma.done.wait (!%p501_p6), %s364_s15, 128  }
  0x80   : > { %684 = vsyncadd (!%p501_p6), %s364_s15, 4294967168  ;;  %s19_s14 = sadd.s32 1, %s707_s14   ;;  %s986_s9 = smov %s691_s10 }
  0x81   : > { %p16_p8 = scmp.ge.s32.totalorder %s19_s14, 4   ;;  %s987_s10 = smov %s695_s11 }
  0x82   : > { %s988_s11 = smov %s854_s7  ;;  %s989_s12 = smov %s703_s13 }
  0x83   : > { %s990_s13 = smov %s992_s27  ;;  %18 = sbr.rel (!%p16_p8) target bundleno = 7 (0x7), region = 96 }
  0x8a   :  { %369 = vsyncpa [#allocation3], 1 }
  0x8b   :  { %371 = vsyncpa [#allocation3 + $0x1], 1 }
  0x8c   :  { %372 = vsyncpa [#allocation6], 1 }
  0x8d   :  { %373 = vsyncpa [#allocation4], 1 }
  0x8e   :  { %375 = vsyncpa [#allocation4 + $0x1], 1 }

</bundles_post_ra>
